<compile_context>
chip_gen: v5e
topology: v5e:2x2
jax: 0.10.0
libtpu: 0.0.40
codegen_flags: <defaults>
</compile_context>

<pallas_src>
import jax
import jax.numpy as jnp
from jax.experimental import pallas as pl
from jax.experimental.pallas import tpu as pltpu


def _round_up(n, m):
    return ((n + m - 1) // m) * m


def _mock_kernel(scale_ref, x_ref, o_ref):
    # scale_ref: SMEM scalar (1,)  == param / C
    # x_ref:     VMEM tile (1, C, T)   (T is a multiple of 128 -> lane-dense)
    # o_ref:     VMEM tile (1, 1, T)
    x = x_ref[...]                                        # (1, C, T)
    s = jnp.sum(x.astype(jnp.float32), axis=1, keepdims=True)  # channel sum -> (1, 1, T)
    o_ref[...] = jax.nn.sigmoid(s * scale_ref[0]).astype(o_ref.dtype)


def mock_model_forward(x, param):
    """x: [B, C, H, W] float32, param: [1] float32 -> [B, 1, H, W] float32."""
    B, C, H, W = x.shape
    HW = H * W

    # --- choose a lane-dense spatial tile T (multiple of 128) ---------------
    # Keep the (1, C, T) f32 input block around <= 4 MiB so that the default
    # double-buffered pipeline (2 input bufs + 2 output bufs) fits comfortably
    # inside the scoped VMEM limit on every generation (v5e 16 MiB default,
    # v7x 32 MiB default / 64 MiB physical).
    bytes_per_col = C * x.dtype.itemsize
    t_budget = max(128, ((4 * 1024 * 1024) // max(bytes_per_col, 1)) // 128 * 128)
    T = min(_round_up(HW, 128), 2048, t_budget)
    T = max(T, 128)
    HW_pad = _round_up(HW, T)

    # --- flatten (and pad) spatial dims in the wrapper ----------------------
    x_flat = x.reshape(B, C, HW)
    if HW_pad != HW:
        # Padded columns produce sigmoid(0)=0.5 but are sliced away below.
        x_flat = jnp.pad(x_flat, ((0, 0), (0, 0), (0, HW_pad - HW)))

    # Fold mean's 1/C and param into one scalar (saves a full-width VPU mul).
    scale = (param.astype(jnp.float32) / jnp.float32(C)).reshape((1,))

    num_t = HW_pad // T

    out_flat = pl.pallas_call(
        _mock_kernel,
        out_shape=jax.ShapeDtypeStruct((B, 1, HW_pad), x.dtype),
        grid=(B, num_t),
        in_specs=[
            pl.BlockSpec(memory_space=pltpu.SMEM),               # scale (untiled scalar)
            pl.BlockSpec((1, C, T), lambda b, t: (b, 0, t)),     # x: one (batch, spatial-tile)
        ],
        out_specs=pl.BlockSpec((1, 1, T), lambda b, t: (b, 0, t)),
        compiler_params=pltpu.CompilerParams(
            dimension_semantics=("parallel", "parallel"),
            vmem_limit_bytes=32 * 1024 * 1024,
        ),
    )(scale, x_flat)

    return out_flat[:, :, :HW].reshape(B, 1, H, W)


if __name__ == "__main__":
    key = jax.random.PRNGKey(0)
    B, C, H, W = 2, 4, 16, 16
    x = jax.random.normal(key, (B, C, H, W), dtype=jnp.float32)
    # Deterministic parameter init: matches torch.nn.Parameter(torch.tensor([1.0]))
    param = jnp.array([1.0], dtype=jnp.float32)

    out = mock_model_forward(x, param)
    out = jax.block_until_ready(out)

    # Reference check (plain JAX)
    ref = jax.nn.sigmoid(jnp.mean(x, axis=1, keepdims=True) * param[0])
    assert out.shape == (B, 1, H, W)
    assert jnp.allclose(out, ref, atol=1e-6, rtol=1e-6)

    print("KERNEL_OK")
</pallas_src>

<mosaic_0001>
module attributes {stable_mosaic.version = 11 : i64} {
  func.func @_mock_kernel(%arg0: i32, %arg1: i32, %arg2: memref<1xf32, #tpu.memory_space<smem>>, %arg3: memref<1x4x256xf32, #tpu.memory_space<vmem>>, %arg4: memref<1x1x256xf32, #tpu.memory_space<vmem>>) attributes {dimension_semantics = [#tpu.dimension_semantics<parallel>, #tpu.dimension_semantics<parallel>], iteration_bounds = array<i64: 2, 1>, scalar_prefetch = 0 : i64, scratch_operands = 0 : i64, tpu.core_type = #tpu.core_type<tc>, window_params = [{transform_indices = @transform_0, window_bounds = array<i64: 1>}, {transform_indices = @transform_1, window_bounds = array<i64: 1, 4, 256>}, {transform_indices = @transform_2, window_bounds = array<i64: 1, 1, 256>}]} {
    %c0 = arith.constant 0 : index
    %c0_0 = arith.constant 0 : index
    %c0_1 = arith.constant 0 : index
    %0 = vector.load %arg3[%c0, %c0_0, %c0_1] : memref<1x4x256xf32, #tpu.memory_space<vmem>>, vector<1x4x256xf32>
    %cst = arith.constant dense<0.000000e+00> : vector<1x256xf32>
    %1 = vector.multi_reduction <add>, %0, %cst [1] : vector<1x4x256xf32> to vector<1x256xf32>
    %2 = vector.shape_cast %1 : vector<1x256xf32> to vector<1x1x256xf32>
    %c0_2 = arith.constant 0 : index
    %3 = memref.load %arg2[%c0_2] : memref<1xf32, #tpu.memory_space<smem>>
    %4 = vector.broadcast %3 : f32 to vector<1x1x256xf32>
    %5 = arith.mulf %2, %4 : vector<1x1x256xf32>
    %6 = arith.negf %5 : vector<1x1x256xf32>
    %7 = math.exp %6 : vector<1x1x256xf32>
    %cst_3 = arith.constant 1.000000e+00 : f32
    %8 = vector.broadcast %cst_3 : f32 to vector<1x1x256xf32>
    %9 = arith.addf %8, %7 : vector<1x1x256xf32>
    %10 = arith.divf %8, %9 : vector<1x1x256xf32>
    %c0_4 = arith.constant 0 : index
    %c0_5 = arith.constant 0 : index
    %c0_6 = arith.constant 0 : index
    %11 = vector.load %arg4[%c0_4, %c0_5, %c0_6] : memref<1x1x256xf32, #tpu.memory_space<vmem>>, vector<1x1x256xf32>
    tpu.vector_store %arg4[%c0_4, %c0_5, %c0_6], %10 {strides = array<i32>} : memref<1x1x256xf32, #tpu.memory_space<vmem>>, vector<1x1x256xf32>,
    return
  }
  func.func @transform_0(%arg0: i32, %arg1: i32) -> i32 {
    %c0_i32 = arith.constant 0 : i32
    %c0_i32_0 = arith.constant 0 : i32
    return %c0_i32 : i32
  }
  func.func @transform_1(%arg0: i32, %arg1: i32) -> (i32, i32, i32) {
    %c0_i32 = arith.constant 0 : i32
    %c0_i32_0 = arith.constant 0 : i32
    return %arg0, %c0_i32, %arg1 : i32, i32, i32
  }
  func.func @transform_2(%arg0: i32, %arg1: i32) -> (i32, i32, i32) {
    %c0_i32 = arith.constant 0 : i32
    %c0_i32_0 = arith.constant 0 : i32
    return %arg0, %c0_i32, %arg1 : i32, i32, i32
  }
}

</mosaic_0001>

<bundles_post_ra>
// kernel: tpu_custom_call.1
= control target key start
LH: loop header
LB: loop body
LE: loop exit
PB: predicated region body
PF: predicated region fallthrough
CT: control target
= control target key end

     0   :  { %s705_s0 = inlined_call_operand.<no memory space> [shape: f32[1], index: 0, kind: input, shape index: {}]   ;;  %s706_s1 = inlined_call_operand.hbm [shape: f32[2,4,256], index: 1, kind: input, shape index: {}]   ;;  %s707_s2 = inlined_call_operand.hbm [shape: f32[2,1,256], index: 2, kind: output, shape index: {}]  }
   0x1   :  { %7 = sst [smem:[#allocation2]] %s705_s0 }
   0x2   :  { %8 = vsyncpa [#allocation4], 0 }
   0x3   :  { %10 = vsyncpa [#allocation4 + $0x1], 0 }
   0x4   :  { %11 = vsyncpa [#allocation5], 0 }
   0x5   :  { %13 = vsyncpa [#allocation5 + $0x1], 0  ;;  %s578_s11 = smov 0   ;;  %s580_s12 = smov 0  }
   0x6   :  { %s582_s13 = smov 0   ;;  %s584_s14 = smov 0  }
   0x7   :  { %s586_s15 = smov 0   ;;  %s588_s16 = smov 0  }
   0x8 LB: > { %s359_s0 = sadd.s32 4294967295, %s558_s16   ;;  %s360_s17 = sadd.s32 4294967294, %s558_s16   ;;  %s558_s16 = sphi %s588_s16, %s19_s16   ;;  %s554_s15 = sphi %s586_s15, %s718_s15   ;;  %s550_s14 = sphi %s584_s14, %s717_s14   ;;  %s546_s13 = sphi %s582_s13, %s716_s13   ;;  %s542_s12 = sphi %s580_s12, %s715_s12   ;;  %s538_s11 = sphi %s578_s11, %s714_s11  }
   0x9   : > { %s31_s18 = sadd.s32 1, %s554_s15  ;;  %s61_s19 = sadd.s32 1, %s546_s13 }
   0xa   : > { %p33_p0 = scmp.ge.s32.totalorder %s31_s18, 2  ;;  %p68_p1 = scmp.ne.s32.totalorder %s546_s13, %s542_s12 }
   0xb   : > { %p69_p2 = scmp.eq.s32.totalorder %s558_s16, 0  ;;  %p74_p3 = scmp.ne.s32.totalorder %s542_s12, %s538_s11 }
   0xc   : > { %s720_s18 = smov (%p33_p0, %s31_s18), 0  ;;  %p75_p5 = scmp.eq.s32.totalorder %s359_s0, 0 }
   0xd   : > { %p619_p4 = por %p69_p2, %p68_p1  ;;  %s56_s21 = ssub.s32 %s554_s15, %s720_s18 }
   0xe   : > { %p100_p6 = scmp.eq.s32.totalorder %s359_s0, 1  ;;  %p59_p7 = scmp.eq.s32.totalorder %s56_s21, 0 }
   0xf   : > { %p625_p8 = por %p75_p5, %p74_p3  ;;  %p106_p10 = scmp.eq.s32.totalorder %s360_s17, 1 }
  0x10   : > { %p629_p9 = por %p100_p6, %p68_p1  ;;  %p362_p12 = scmp.ge.s32.totalorder %s558_s16, 2 }
  0x11   : > { %s634_s24 = scalar_select %p59_p7, %s546_s13, %s61_s19  }
  0x12   : > { %p636_p11 = por %p106_p10, %p74_p3  ;;  %p388_p13 = scmp.lt.s32.totalorder %s558_s16, 2 }
  0x13   : > { %s129_s26 = sand.u32 1, %s546_s13   ;;  %s375_s28 = sshll.u32 %s554_s15, 3 }
  0x14   : > { %s363_s27 = sshll.u32 %s129_s26, 3  ;;  %s140_s3 = scalar_lea.hbm %s706_s1, %s375_s28 }
  0x15   : > { %s133_s4 = scalar_lea.vmem [#allocation3], %s363_s27  ;;  %s142_s6 = sshll.u32 %s140_s3, 4  ;;  %s143_s6 = int_to_ptr.hbm [resolvable:$true] %s142_s6 }
  0x16   : > { %s144_s5 = sshll.u32 %s133_s4, 4  ;;  %p381_p0 = pnand %p388_p13, %p619_p4  ;;  %s145_s5 = int_to_ptr.vmem [resolvable:$true] %s144_s5 }
  0x17   : > { %p366_p1 = scmp.ge.s32.totalorder %s558_s16, 1  ;;  %p149_p2 = scmp.lt.s32.totalorder %s558_s16, 3 }
  0x18   : > { %s130_s7 = scalar_lea.sflag [#allocation4], %s129_s26 }
  0x19   : > { %383 = dma.hbm_to_vmem [thread:$0]  (!%p381_p0), %s143_s6, 128, %s145_s5, %s130_s7  }
  0x1a   : > { %p150_p3 = pnand %p366_p1, %p149_p2 }
  0x1b   : > { %s652_s8 = sand.u32 (!%p150_p3), 1, %s542_s12  }
  0x1c   : > { %153 = sbr.rel (%p150_p3) target bundleno = 93 (0x5d), region = 28  ;;  %s367_s9 = sshll.u32 (!%p150_p3), %s652_s8, 3 }
  0x1d   : > { %s156_s10 = scalar_lea.sflag (!%p150_p3), [#allocation4], %s652_s8  ;;  %s159_s0 = scalar_lea.vmem (!%p150_p3), [#allocation3], %s367_s9 }
  0x21   : > { %529 = dma.done.wait (%p625_p8), %s156_s10, 128  }
  0x22   : > { %531 = vsyncadd (%p625_p8), %s156_s10, 4294967168  ;;  %v183_v0 = vld [vmem:[%s159_s0] sm:$0xff]  ;;  %vm190_vm0 = vcmask 1043456   ;;  %s205_s17 = sld [smem:[#allocation2]]  ;;  %s368_s19 = sshll.u32 %s652_s8, 1  ;;  %v253_v41 = vlaneseq  ;;  %vm250_vm8 = vcmask 1040384  }
  0x23   : > { %185 = vst [vmem:[#allocation1] ss:$2 sm:$0xff] %v183_v0  ;;  %s372_s20 = sshll.u32 %s550_s14, 1  ;;  %s180_s14 = scalar_lea.vmem [#allocation6], %s368_s19 }
  0x24   : > { %s271_s26 = scalar_lea.hbm %s707_s2, %s372_s20  ;;  %s273_s27 = sshll.u32 %s180_s14, 4  ;;  %vm255_vm10 = vcmp.lt.s32.totalorder %v253_v41, 256  ;;  %s274_s27 = int_to_ptr.vmem [resolvable:$true] %s273_s27 }
  0x25   : > { %s275_s28 = sshll.u32 %s271_s26, 4  ;;  %s259_s29 = scalar_lea.sflag [#allocation5], %s652_s8  ;;  %s276_s28 = int_to_ptr.hbm [resolvable:$true] %s275_s28 }
  0x26   : > { %s490_s30 = sshra.s32 %s276_s28, 4  ;;  %s496_s6 = scalar_lea.hbm %s707_s2, 4  ;;  %s491_s30 = int_to_ptr.hbm [resolvable:$true] %s490_s30 }
  0x27   : > { %s492_s3 = scalar_lea.hbm %s491_s30, 2  ;;  %p497_p7 = scmp.lt.s32.totalorder %s491_s30, %s707_s2 }
  0x28   : > { %v206_v15 = vstv %s205_s17  ;;  %p493_p4 = scmp.ne.s32.totalorder %s491_s30, %s492_s3  ;;  %p498_p8 = scmp.lt.s32.totalorder %s496_s6, %s492_s3 }
  0x2a   : > { %v186_v1 = vld.sshfl [vmem:[#allocation1] sm:$0xff pattern:$0x75316420]  ;;  %v187_v2 = vld.sshfl [vmem:[#allocation1 + $0x8] sm:$0xff pattern:$0x75316420]  ;;  %p494_p5 = pnand %p493_p4, %p629_p9  ;;  %p499_p10 = por %p498_p8, %p497_p7 }
  0x2b   : > { %v191_v3 = vsel %vm190_vm0, %v186_v1, 0.0  ;;  %v198_v4 = vsel %vm190_vm0, %v187_v2, 0.0 }
  0x2c   : > { %v192_v5 = vrot.slane %v191_v3, 4  ;;  %v199_v6 = vrot.slane %v198_v4, 4  ;;  %p495_p6 = pneg %p494_p5 }
  0x2e   : > { %v193_v7 = vadd.f32 %v192_v5, %v191_v3  ;;  %v200_v8 = vadd.f32 %v199_v6, %v198_v4  ;;  %p500_p13 = pnand %p499_p10, %p495_p6 }
  0x30   : > { %v194_v9 = vrot.slane %v193_v7, 2  ;;  %v201_v10 = vrot.slane %v200_v8, 2 }
  0x32   : > { %v195_v11 = vadd.f32 %v194_v9, %v193_v7  ;;  %v202_v12 = vadd.f32 %v201_v10, %v200_v8 }
  0x34   : > { %v196_v13 = vrot.slane %v195_v11, 1  ;;  %v203_v14 = vrot.slane %v202_v12, 1 }
  0x36   : > { %v197_v16 = vadd.f32 %v196_v13, %v195_v11  ;;  %v204_v17 = vadd.f32 %v203_v14, %v202_v12 }
  0x38   : > { %v207_v18 = vmul.f32 %v206_v15, %v197_v16  ;;  %v208_v19 = vmul.f32 %v206_v15, %v204_v17 }
  0x3a   : > { %v369_v20 = vmul.f32 -1.442695, %v207_v18  ;;  %v370_v21 = vmul.f32 -1.442695, %v208_v19 }
  0x3c   : > { %438 = vpow2.f32 %v369_v20 }
  0x3d   : > { %440 = vpow2.f32 %v370_v21 }
  0x42   : > { %v439_v22 = vpop.eup %438 }
  0x43   : > { %v441_v23 = vpop.eup %440  ;;  %v215_v24 = vadd.f32 1.0, %v439_v22 }
  0x44   : > { %v216_v25 = vadd.f32 1.0, %v441_v23 }
  0x45   : > { %442 = vrcp.f32 %v215_v24  ;;  %vm222_vm3 = vweird.f32 %v215_v24  ;;  %v228_v37 = vand.u32 2147483648, %v215_v24  ;;  %v226_v39 = vand.u32 2147483647, %v215_v24 }
  0x46   : > { %444 = vrcp.f32 %v216_v25  ;;  %v243_v33 = vand.u32 2147483648, %v216_v25  ;;  %v241_v35 = vand.u32 2147483647, %v216_v25  ;;  %vm237_vm5 = vweird.f32 %v216_v25 }
  0x47   : > { %v229_v45 = vor.u32 1.1754944e-38, %v228_v37  ;;  %vm227_vm9 = vcmp.eq.f32.partialorder %v226_v39, 8.507059e+37 }
  0x48   : > { %v244_v42 = vor.u32 1.1754944e-38, %v243_v33  ;;  %vm242_vm7 = vcmp.eq.f32.partialorder %v241_v35, 8.507059e+37 }
  0x4b   : > { %v443_v26 = vpop.eup %442 }
  0x4c   : > { %v445_v27 = vpop.eup %444  ;;  %v218_v28 = vmul.f32 %v443_v26, %v215_v24  ;;  %vm223_vm1 = vweird.f32 %v443_v26 }
  0x4d   : > { %v233_v29 = vmul.f32 %v445_v27, %v216_v25  ;;  %vm238_vm2 = vweird.f32 %v445_v27  ;;  %vm665_vm4 = vmor %vm222_vm3, %vm223_vm1 }
  0x4e   : > { %v219_v30 = vsub.f32 1.0, %v218_v28  ;;  %vm239_vm6 = vmor %vm237_vm5, %vm238_vm2 }
  0x4f   : > { %v234_v31 = vsub.f32 1.0, %v233_v29 }
  0x50   : > { %v220_v32 = vmul.f32 %v443_v26, %v219_v30 }
  0x51   : > { %v235_v34 = vmul.f32 %v445_v27, %v234_v31 }
  0x52   : > { %v221_v36 = vadd.f32 %v443_v26, %v220_v32 }
  0x53   : > { %v236_v40 = vadd.f32 %v445_v27, %v235_v34 }
  0x54   : > { %v225_v43 = vsel %vm665_vm4, %v443_v26, %v221_v36 }
  0x55   : > { %v240_v44 = vsel %vm239_vm6, %v445_v27, %v236_v40  ;;  %v230_v48 = vsel %vm227_vm9, %v229_v45, %v225_v43 }
  0x56   : > { %v245_v46 = vsel %vm242_vm7, %v244_v42, %v240_v44 }
  0x57   : > { %v249_v47 = vrot.slane %v245_v46, 7 }
  0x59   : > { %v251_v49 = vsel %vm250_vm8, %v230_v48, %v249_v47 }
  0x5a   : > { %257 = vst.msk [vmem:[%s180_s14] sm:$0x3] %vm255_vm10, %v251_v49 }
  0x5b   : > { %503 = shalt.err (!%p500_p13)
}
  0x5c   : > { %378 = dma.vmem_to_hbm [thread:$0]  (%p629_p9), %s274_s27, 32, %s276_s28, %s259_s29  }
  0x5d PF: > { %s287_s8 = sand.u32 1, %s538_s11   ;;  %p385_p0 = pnand %p362_p12, %p636_p11 }
  0x5e   : > { %s288_s10 = scalar_lea.sflag [#allocation5], %s287_s8 }
  0x5f   : > { %p386_p1 = pneg %p385_p0 }
  0x61   : > { %533 = dma.done.wait (%p386_p1), %s288_s10, 32  }
  0x62   : > { %535 = vsyncadd (%p386_p1), %s288_s10, 4294967264  ;;  %s19_s16 = sadd.s32 1, %s558_s16   ;;  %s714_s11 = smov %s542_s12 }
  0x63   : > { %p16_p2 = scmp.ge.s32.totalorder %s19_s16, 4   ;;  %s715_s12 = smov %s546_s13 }
  0x64   : > { %s716_s13 = smov %s634_s24  ;;  %s717_s14 = smov %s554_s15 }
  0x65   : > { %s718_s15 = smov %s720_s18  ;;  %18 = sbr.rel (!%p16_p2) target bundleno = 8 (0x8), region = 73 }
  0x6a   :  { %294 = vsyncpa [#allocation4], 1 }
  0x6b   :  { %296 = vsyncpa [#allocation4 + $0x1], 1 }
  0x6c   :  { %297 = vsyncpa [#allocation5], 1 }
  0x6d   :  { %299 = vsyncpa [#allocation5 + $0x1], 1 }

</bundles_post_ra>
